<compile_context>
chip_gen: v7x
topology: tpu7x:2x2x1
jax: 0.10.0
libtpu: 0.0.40
codegen_flags: <defaults>
</compile_context>

<pallas_src>
import jax
import jax.numpy as jnp
from jax.experimental import pallas as pl
from jax.experimental.pallas import tpu as pltpu

_T_CHUNK = 256  # T-chunk for in-kernel temporaries (bounds (Bb, tc, D) buffers)


def self_attention_kernel(seq_ref, len_ref, w_ref, b_ref, ctx_ref, scores_ref):
    Bb, T, D = seq_ref.shape
    t_chunk = min(T, _T_CHUNK)

    w = w_ref[...].astype(jnp.float32).reshape(1, 1, D)   # lane-aligned attn row
    bias = b_ref[0, 0]                                    # scalar from SMEM

    # --- energies = tanh(<seq, w> + b): chunked VPU multiply + XLU lane reduce
    #     (no N=1 MXU matmul, no full (Bb,T,D) product temporary) ---
    e_parts = []
    for t0 in range(0, T, t_chunk):                       # static unroll
        tc = min(t_chunk, T - t0)
        s = seq_ref[:, t0:t0 + tc, :].astype(jnp.float32)  # upcast in-kernel
        e_parts.append(jnp.sum(s * w, axis=-1))            # (Bb, tc)
    energies = e_parts[0] if len(e_parts) == 1 else jnp.concatenate(e_parts, -1)
    energies = jnp.tanh(energies + bias)                   # (Bb, T), EUP

    # --- sequence mask + fused masked softmax == renorm(softmax(e) * mask) ---
    t_idx = jax.lax.broadcasted_iota(jnp.int32, (Bb, T), 1)
    mask = t_idx < len_ref[...]                            # (Bb, T) bool
    m = jnp.max(jnp.where(mask, energies, jnp.float32(-1e30)), -1, keepdims=True)
    # Clamp the exponent so zero-length rows never produce inf (both branches
    # of where are evaluated); valid rows are unaffected (energies <= m there).
    p = jnp.where(mask, jnp.exp(jnp.minimum(energies - m, 0.0)), 0.0)
    denom = jnp.sum(p, axis=-1, keepdims=True)
    # Exact reciprocal (review: approx=True only normalized to ~1e-3).
    inv = pl.reciprocal(jnp.maximum(denom, jnp.float32(1e-30)), approx=False)
    scores = p * inv                                       # (Bb, T)
    scores_ref[...] = scores

    # --- contexts = sum_t scores[b,t] * seq[b,t,:], chunked accumulation ---
    acc = jnp.zeros((Bb, D), jnp.float32)
    for t0 in range(0, T, t_chunk):                        # static unroll
        tc = min(t_chunk, T - t0)
        s = seq_ref[:, t0:t0 + tc, :].astype(jnp.float32)
        acc = acc + jnp.sum(s * scores[:, t0:t0 + tc, None], axis=1)
    ctx_ref[...] = acc


def _vmem_budgets():
    """Generation-aware (tile_budget_bytes, vmem_limit_bytes)."""
    vmem = 64 * 1024 * 1024                      # conservative default (v7x per-TC)
    try:
        vmem = int(getattr(pltpu.get_tpu_info(), "vmem_capacity_bytes", vmem))
    except Exception:
        pass
    # 128 MiB parts (v5e/v6e) -> 96 MiB limit / 48 MiB tile budget;
    # 64 MiB per-TC (v7x)     -> 48 MiB limit / 24 MiB tile budget.
    vmem_limit = min(96 * 1024 * 1024, max(32 * 1024 * 1024, (vmem * 3) // 4))
    return vmem_limit // 2, vmem_limit


def _pick_block_b(B, T, D, itemsize, tile_budget_bytes, t_chunk):
    """Batch block: fits the budget, keeps >= ~4 grid steps, 8-aligned or full."""
    # 2x double-buffered input tile + one f32 T-chunk of working set + small.
    row_bytes = 2 * T * D * itemsize + t_chunk * D * 4 + 8 * T * 4
    rows_budget = max(1, tile_budget_bytes // max(1, row_bytes))
    target = -(-B // 4)                      # aim for >= 4 grid steps (2/TC on v7x)
    blk = min(rows_budget, target, B)
    if blk >= B or B <= 8:
        return B                             # tiny batch: single full block
    blk = max(8, (blk // 8) * 8)             # second-to-last dims must be 8-aligned
    return min(blk, B)


def self_attention(sequence, lengths, w, b, *, block_b=None):
    """sequence: (B, T, D) f32/bf16; lengths: (B,) int; w: (D, 1); b: (1,)."""
    B, T, D = sequence.shape
    lengths2 = lengths.reshape(B, 1).astype(jnp.int32)
    w2 = w.reshape(1, D).astype(jnp.float32)              # lane-major attention row
    b2 = b.reshape(1, 1).astype(jnp.float32)

    t_chunk = min(T, _T_CHUNK)
    itemsize = jnp.dtype(sequence.dtype).itemsize
    tile_budget, vmem_limit = _vmem_budgets()
    if block_b is None:
        block_b = _pick_block_b(B, T, D, itemsize, tile_budget, t_chunk)

    # Guard against the compile-time VMEM-overflow hazard for huge T*D rows.
    est = 2 * block_b * T * D * itemsize + block_b * t_chunk * D * 4
    if est > vmem_limit:
        # TODO(synk): T-tiled online-softmax grid axis for this regime.
        raise ValueError(
            f"sequence row too large for single-T-block kernel "
            f"(needs ~{est} B > vmem limit {vmem_limit} B)")

    grid = (pl.cdiv(B, block_b),)

    out_shape = (
        jax.ShapeDtypeStruct((B, D), jnp.float32),        # contexts
        jax.ShapeDtypeStruct((B, T), jnp.float32),        # scores
    )
    grid_spec = pltpu.PrefetchScalarGridSpec(
        num_scalar_prefetch=0,
        grid=grid,
        in_specs=[
            pl.BlockSpec((block_b, T, D), lambda i: (i, 0, 0)),      # sequence
            pl.BlockSpec((block_b, 1), lambda i: (i, 0)),            # lengths
            pl.BlockSpec((1, D), lambda i: (0, 0)),                  # w (shared)
            pl.BlockSpec(memory_space=pltpu.MemorySpace.SMEM),       # bias scalar
        ],
        out_specs=(
            pl.BlockSpec((block_b, D), lambda i: (i, 0)),            # contexts
            pl.BlockSpec((block_b, T), lambda i: (i, 0)),            # scores
        ),
    )
    return pl.pallas_call(
        self_attention_kernel,
        out_shape=out_shape,
        grid_spec=grid_spec,
        compiler_params=pltpu.CompilerParams(
            dimension_semantics=("parallel",),            # megacore sharding
            vmem_limit_bytes=vmem_limit,
        ),
    )(sequence, lengths2, w2, b2)


if __name__ == "__main__":
    B, T, D = 2, 8, 32  # batch, seq_len, attention_size

    key = jax.random.PRNGKey(0)
    k_seq, k_w, k_b = jax.random.split(key, 3)

    sequence = jax.random.normal(k_seq, (B, T, D), dtype=jnp.float32)
    lengths = jnp.array([8, 5], dtype=jnp.int32)

    # Deterministic init of the single Linear(attention_size, 1) layer
    # (uniform(-1/sqrt(D), 1/sqrt(D)), same convention as nn.Linear).
    bound = 1.0 / jnp.sqrt(jnp.float32(D))
    w = jax.random.uniform(k_w, (D, 1), jnp.float32, -bound, bound)
    b = jax.random.uniform(k_b, (1,), jnp.float32, -bound, bound)

    contexts, scores = self_attention(sequence, lengths, w, b)
    jax.block_until_ready((contexts, scores))

    # Pure-JAX reference (matches the PyTorch module semantics).
    e_ref = jnp.tanh(jnp.einsum("btd,d->bt", sequence, w[:, 0]) + b[0])
    mask = (jnp.arange(T)[None, :] < lengths[:, None]).astype(jnp.float32)
    sm = jax.nn.softmax(e_ref, axis=-1) * mask
    scores_ref = sm / jnp.sum(sm, axis=-1, keepdims=True)
    ctx_ref = jnp.sum(sequence * scores_ref[:, :, None], axis=1)

    assert contexts.shape == (B, D) and scores.shape == (B, T)
    assert bool(jnp.all(jnp.isfinite(contexts))) and bool(jnp.all(jnp.isfinite(scores)))
    # scores sum to 1 over valid positions (exact reciprocal -> tight tol)
    assert bool(jnp.allclose(jnp.sum(scores, axis=-1), 1.0, atol=1e-5))
    # padding positions are exactly zero
    assert bool(jnp.all(scores[1, 5:] == 0.0))
    # match the reference math
    assert bool(jnp.allclose(scores, scores_ref, atol=1e-4))
    assert bool(jnp.allclose(contexts, ctx_ref, atol=1e-4))

    # bf16 ingestion path (no wrapper upcast; kernel upcasts after load).
    ctx_bf, sc_bf = self_attention(sequence.astype(jnp.bfloat16), lengths, w, b)
    jax.block_until_ready((ctx_bf, sc_bf))
    assert bool(jnp.all(jnp.isfinite(ctx_bf))) and bool(jnp.all(jnp.isfinite(sc_bf)))
    assert bool(jnp.allclose(ctx_bf, ctx_ref, atol=5e-2))
    assert bool(jnp.all(sc_bf[1, 5:] == 0.0))

    print("KERNEL_OK")
</pallas_src>

<mosaic_0001>
module attributes {stable_mosaic.version = 11 : i64} {
  func.func @self_attention_kernel(%arg0: i32, %arg1: memref<2x8x32xf32, #tpu.memory_space<vmem>>, %arg2: memref<2x1xi32, #tpu.memory_space<vmem>>, %arg3: memref<1x32xf32, #tpu.memory_space<vmem>>, %arg4: memref<1x1xf32, #tpu.memory_space<smem>>, %arg5: memref<2x32xf32, #tpu.memory_space<vmem>>, %arg6: memref<2x8xf32, #tpu.memory_space<vmem>>) attributes {dimension_semantics = [#tpu.dimension_semantics<parallel>], iteration_bounds = array<i64: 1>, scalar_prefetch = 0 : i64, scratch_operands = 0 : i64, tpu.core_type = #tpu.core_type<tc>, window_params = [{transform_indices = @transform_0, window_bounds = array<i64: 2, 8, 32>}, {transform_indices = @transform_1, window_bounds = array<i64: 2, 1>}, {pipeline_mode = #tpu.pipeline_mode<synchronous>, transform_indices = @transform_2, window_bounds = array<i64: 1, 32>}, {transform_indices = @transform_3, window_bounds = array<i64: 1, 1>}, {transform_indices = @transform_4, window_bounds = array<i64: 2, 32>}, {transform_indices = @transform_5, window_bounds = array<i64: 2, 8>}]} {
    %c0 = arith.constant 0 : index
    %c0_0 = arith.constant 0 : index
    %0 = vector.load %arg3[%c0, %c0_0] : memref<1x32xf32, #tpu.memory_space<vmem>>, vector<1x32xf32>
    %1 = vector.shape_cast %0 : vector<1x32xf32> to vector<1x1x32xf32>
    %c0_1 = arith.constant 0 : index
    %c0_2 = arith.constant 0 : index
    %2 = memref.load %arg4[%c0_1, %c0_2] : memref<1x1xf32, #tpu.memory_space<smem>>
    %c0_3 = arith.constant 0 : index
    %c0_4 = arith.constant 0 : index
    %c0_5 = arith.constant 0 : index
    %3 = vector.load %arg1[%c0_3, %c0_4, %c0_5] : memref<2x8x32xf32, #tpu.memory_space<vmem>>, vector<2x8x32xf32>
    %4 = vector.broadcast %1 : vector<1x1x32xf32> to vector<2x8x32xf32>
    %5 = arith.mulf %3, %4 : vector<2x8x32xf32>
    %cst = arith.constant dense<0.000000e+00> : vector<2x8xf32>
    %6 = vector.multi_reduction <add>, %5, %cst [2] : vector<2x8x32xf32> to vector<2x8xf32>
    %7 = vector.broadcast %2 : f32 to vector<2x8xf32>
    %8 = arith.addf %6, %7 : vector<2x8xf32>
    %9 = math.tanh %8 : vector<2x8xf32>
    %10 = tpu.iota {dimensions = array<i32: 1>} : vector<2x8xi32>
    %c0_6 = arith.constant 0 : index
    %c0_7 = arith.constant 0 : index
    %11 = vector.load %arg2[%c0_6, %c0_7] : memref<2x1xi32, #tpu.memory_space<vmem>>, vector<2x1xi32>
    %12 = vector.broadcast %11 : vector<2x1xi32> to vector<2x8xi32>
    %13 = arith.cmpi slt, %10, %12 : vector<2x8xi32>
    %cst_8 = arith.constant -1.000000e+30 : f32
    %14 = vector.broadcast %cst_8 : f32 to vector<2x8xf32>
    %15 = arith.select %13, %9, %14 : vector<2x8xi1>, vector<2x8xf32>
    %cst_9 = arith.constant dense<0xFF800000> : vector<2xf32>
    %16 = vector.multi_reduction <maximumf>, %15, %cst_9 [1] : vector<2x8xf32> to vector<2xf32>
    %17 = vector.shape_cast %16 : vector<2xf32> to vector<2x1xf32>
    %18 = vector.broadcast %17 : vector<2x1xf32> to vector<2x8xf32>
    %19 = arith.subf %9, %18 : vector<2x8xf32>
    %cst_10 = arith.constant 0.000000e+00 : f32
    %20 = vector.broadcast %cst_10 : f32 to vector<2x8xf32>
    %21 = arith.minimumf %19, %20 : vector<2x8xf32>
    %22 = math.exp %21 : vector<2x8xf32>
    %cst_11 = arith.constant 0.000000e+00 : f32
    %23 = vector.broadcast %cst_11 : f32 to vector<2x8xf32>
    %24 = arith.select %13, %22, %23 : vector<2x8xi1>, vector<2x8xf32>
    %cst_12 = arith.constant dense<0.000000e+00> : vector<2xf32>
    %25 = vector.multi_reduction <add>, %24, %cst_12 [1] : vector<2x8xf32> to vector<2xf32>
    %26 = vector.shape_cast %25 : vector<2xf32> to vector<2x1xf32>
    %cst_13 = arith.constant 1.000000e-30 : f32
    %27 = vector.broadcast %cst_13 : f32 to vector<2x1xf32>
    %28 = arith.maximumf %26, %27 : vector<2x1xf32>
    %29 = tpu.reciprocal %28 : vector<2x1xf32> -> vector<2x1xf32>
    %30 = vector.broadcast %29 : vector<2x1xf32> to vector<2x8xf32>
    %31 = arith.mulf %24, %30 : vector<2x8xf32>
    %c0_14 = arith.constant 0 : index
    %c0_15 = arith.constant 0 : index
    %32 = vector.load %arg6[%c0_14, %c0_15] : memref<2x8xf32, #tpu.memory_space<vmem>>, vector<2x8xf32>
    tpu.vector_store %arg6[%c0_14, %c0_15], %31 {strides = array<i32>} : memref<2x8xf32, #tpu.memory_space<vmem>>, vector<2x8xf32>,
    %cst_16 = arith.constant 0.000000e+00 : f32
    %33 = vector.broadcast %cst_16 : f32 to vector<2x32xf32>
    %c0_17 = arith.constant 0 : index
    %c0_18 = arith.constant 0 : index
    %c0_19 = arith.constant 0 : index
    %34 = vector.load %arg1[%c0_17, %c0_18, %c0_19] : memref<2x8x32xf32, #tpu.memory_space<vmem>>, vector<2x8x32xf32>
    %35 = vector.shape_cast %31 : vector<2x8xf32> to vector<2x8x1xf32>
    %36 = vector.broadcast %35 : vector<2x8x1xf32> to vector<2x8x32xf32>
    %37 = arith.mulf %34, %36 : vector<2x8x32xf32>
    %cst_20 = arith.constant dense<0.000000e+00> : vector<2x32xf32>
    %38 = vector.multi_reduction <add>, %37, %cst_20 [1] : vector<2x8x32xf32> to vector<2x32xf32>
    %39 = arith.addf %33, %38 : vector<2x32xf32>
    %c0_21 = arith.constant 0 : index
    %c0_22 = arith.constant 0 : index
    %40 = vector.load %arg5[%c0_21, %c0_22] : memref<2x32xf32, #tpu.memory_space<vmem>>, vector<2x32xf32>
    tpu.vector_store %arg5[%c0_21, %c0_22], %39 {strides = array<i32>} : memref<2x32xf32, #tpu.memory_space<vmem>>, vector<2x32xf32>,
    return
  }
  func.func @transform_0(%arg0: i32) -> (i32, i32, i32) {
    %c0_i32 = arith.constant 0 : i32
    %c0_i32_0 = arith.constant 0 : i32
    %c0_i32_1 = arith.constant 0 : i32
    return %arg0, %c0_i32, %c0_i32_0 : i32, i32, i32
  }
  func.func @transform_1(%arg0: i32) -> (i32, i32) {
    %c0_i32 = arith.constant 0 : i32
    %c0_i32_0 = arith.constant 0 : i32
    return %arg0, %c0_i32 : i32, i32
  }
  func.func @transform_2(%arg0: i32) -> (i32, i32) {
    %c0_i32 = arith.constant 0 : i32
    %c0_i32_0 = arith.constant 0 : i32
    %c0_i32_1 = arith.constant 0 : i32
    return %c0_i32, %c0_i32_0 : i32, i32
  }
  func.func @transform_3(%arg0: i32) -> (i32, i32) {
    %c0_i32 = arith.constant 0 : i32
    %c0_i32_0 = arith.constant 0 : i32
    %c0_i32_1 = arith.constant 0 : i32
    return %c0_i32, %c0_i32_0 : i32, i32
  }
  func.func @transform_4(%arg0: i32) -> (i32, i32) {
    %c0_i32 = arith.constant 0 : i32
    %c0_i32_0 = arith.constant 0 : i32
    return %arg0, %c0_i32 : i32, i32
  }
  func.func @transform_5(%arg0: i32) -> (i32, i32) {
    %c0_i32 = arith.constant 0 : i32
    %c0_i32_0 = arith.constant 0 : i32
    return %arg0, %c0_i32 : i32, i32
  }
}

</mosaic_0001>

<bundles_post_ra>
// kernel: tpu_custom_call.1
= control target key start
LH: loop header
LB: loop body
LE: loop exit
PB: predicated region body
PF: predicated region fallthrough
CT: control target
= control target key end

     0   :  { %12 = vsyncpa [#allocation4], 0  ;;  %s391_s0 = inlined_call_operand.hbm [shape: f32[2,8,32], index: 0, kind: input, shape index: {}]   ;;  %s392_s1 = inlined_call_operand.vmem [shape: s32[2,1], index: 1, kind: input, shape index: {}]   ;;  %s393_s2 = inlined_call_operand.vmem [shape: f32[1,32], index: 2, kind: input, shape index: {}]   ;;  %s394_s3 = inlined_call_operand.<no memory space> [shape: f32[1,1], index: 3, kind: input, shape index: {}]   ;;  %s395_s4 = inlined_call_operand.hbm [shape: f32[2,32], index: 4, kind: output, shape index: {0}]   ;;  %s396_s5 = inlined_call_operand.hbm [shape: f32[2,8], index: 5, kind: output, shape index: {1}]  }
   0x1   :  { %13 = vsyncpa [#allocation5], 0 }
   0x2   :  { %14 = vsyncpa [#allocation8], 0  ;;  %s290_s18 = smov [#allocation3]   ;;  %s218_s22 = scalar_lea.hbm %s391_s0, 256 }
   0x3   :  { %s20_s19 = sshll.u32 %s290_s18, 4  ;;  %p219_p0 = scmp.ne.s32.totalorder %s391_s0, %s218_s22  ;;  %s21_s19 = int_to_ptr.vmem [resolvable:$true] %s20_s19 }
   0x4   :  { %p222_p1 = scmp.lt.u32.totalorder %s218_s22, %s391_s0 }
   0x6   :  { %p224_p2 = pnand %p222_p1, %p219_p0 }
   0x8   :  { %227 = shalt.err (!%p224_p2)
}
   0x9   :  { %s228_s27 = scalar_lea.vmem %s21_s19, 256  ;;  %p233_p4 = scmp.lt.s32.totalorder %s21_s19, %s21_s19 }
   0xa   :  { %p229_p3 = scmp.ne.s32.totalorder %s21_s19, %s228_s27  ;;  %p234_p5 = scmp.lt.s32.totalorder %s228_s27, %s228_s27 }
   0xc   :  { %p235_p6 = por %p234_p5, %p233_p4 }
   0xe   :  { %p236_p7 = pnand %p235_p6, %p229_p3 }
  0x10   :  { %239 = shalt.err (!%p236_p7)
}
  0x11   :  { %s291_s28 = smov 128   ;;  %s292_s29 = smov 8  }
  0x12   :  { %26 = dma.hbm_to_vmem [thread:$0]  %s391_s0, 256, %s21_s19, [#allocation4], %s291_s28, %s291_s28, %s292_s29  }
  0x13   :  { %284 = dma.done.wait [#allocation4], 256  }
  0x14   :  { %285 = vsyncadd [#allocation4], 4294967040  ;;  %v293_v0 = vmov 0   ;;  %v199_v1 = vld [vmem:[%s393_s2] ss:$0 sm:$0xff]  ;;  %vm48_vm0 = vcmask 261120   ;;  %v55_v9 = vstv %s394_s3  ;;  %v60_v14 = vlaneseq }
  0x15   :  { %206 = vset.pattern.permute.xlu1 %v293_v0  ;;  %207 = vset.pattern.permute.xlu0 %v293_v0  ;;  %v341_v2 = vld [vmem:[#allocation3] sm:$0xff]  ;;  %v343_v3 = vld [vmem:[#allocation3 + $0x8] sm:$0xff]  ;;  %vm77_vm1 = vcmask 1041409   ;;  %vm81_vm3 = vcmask 58368  }
  0x16   :  { %v46_v4 = vmul.f32 %v199_v1, %v341_v2  ;;  %v47_v5 = vmul.f32 %v199_v1, %v343_v3  ;;  %v62_v6 = vld [vmem:[%s392_s1] sm:$0x3]  ;;  %v61_v15 = vand.u32 127, %v60_v14  ;;  %v70_v16 = vshrl.u32 %v60_v14, 7  ;;  %s294_s1 = smov [#allocation7]  }
  0x17   :  { %64 = vperm.xlu1 %206, %v62_v6   ;;  %s186_s3 = sshll.u32 %s294_s1, 4  ;;  %s187_s3 = int_to_ptr.vmem [resolvable:$true] %s186_s3 }
  0x18   :  { %v49_v7 = vsel %vm48_vm0, %v46_v4, 0.0  ;;  %v52_v8 = vsel %vm48_vm0, %v47_v5, 0.0  ;;  %v71_v17 = vsub.s32 %v61_v15, %v70_v16  ;;  %v88_v26 = vsub.s32 0, %v70_v16  ;;  %s240_s11 = scalar_lea.vmem %s187_s3, 32  ;;  %p245_p9 = scmp.lt.s32.totalorder %s187_s3, %s187_s3 }
  0x19   :  { %50 = vadd.xlane.f32.xlu0 %v49_v7  ;;  %v92_v27 = vsub.s32 1, %v70_v16  ;;  %p241_p8 = scmp.ne.s32.totalorder %s187_s3, %s240_s11  ;;  %p246_p10 = scmp.lt.s32.totalorder %s240_s11, %s240_s11 }
  0x1b   :  { %p247_p11 = por %p246_p10, %p245_p9 }
  0x1d   :  { %53 = vadd.xlane.f32.xlu0 %v52_v8  ;;  %p248_p12 = pnand %p247_p11, %p241_p8 }
  0x96   :  { %v65_v19 = vpop.permute.xlu1 %64 }
  0x97   :  { %vm66_vm2 = vcmp.lt.s32.totalorder %v61_v15, %v65_v19 }
  0xa6   :  { %v51_v10 = vpop.xlane.xlu0 %50 }
  0xa7   :  { %v56_v11 = vadd.f32 %v55_v9, %v51_v10 }
  0xa9   :  { %208 = vtanh.f32 %v56_v11 }
  0xaa   :  { %v54_v12 = vpop.xlane.xlu0 %53 }
  0xab   :  { %v57_v13 = vadd.f32 %v55_v9, %v54_v12 }
  0xad   :  { %210 = vtanh.f32 %v57_v13 }
  0xb3   :  { %v209_v18 = vpop.eup %208 }
  0xb4   :  { %v72_v21 = vrot.slane %v209_v18, %v71_v17 }
  0xb7   :  { %v211_v20 = vpop.eup %210 }
  0xb8   :  { %v76_v22 = vrot.slane %v211_v20, %v71_v17 }
  0xba   :  { %v78_v23 = vsel %vm77_vm1, %v76_v22, %v72_v21 }
  0xbb   :  { %v80_v24 = vsel %vm66_vm2, %v78_v23, -1e+30 }
  0xbc   :  { %v82_v25 = vsel %vm81_vm3, %v80_v24, -inf }
  0xbd   :  { %83 = vmax.xlane.f32.xlu1 %v82_v25 }
 0x14a   :  { %v84_v28 = vpop.xlane.xlu1 %83 }
 0x14b   :  { %v89_v29 = vrot.slane %v84_v28, %v88_v26  ;;  %v93_v30 = vrot.slane %v84_v28, %v92_v27 }
 0x14d   :  { %v96_v31 = vsub.f32 %v209_v18, %v89_v29  ;;  %v97_v32 = vsub.f32 %v211_v20, %v93_v30 }
 0x14f   :  { %v98_v33 = vmin.f32 %v96_v31, 0.0  ;;  %v99_v34 = vmin.f32 %v97_v32, 0.0 }
 0x151   :  { %v100_v35 = vmul.f32 1.442695, %v98_v33  ;;  %v102_v36 = vmul.f32 1.442695, %v99_v34 }
 0x153   :  { %212 = vpow2.f32 %v100_v35 }
 0x154   :  { %214 = vpow2.f32 %v102_v36 }
 0x15d   :  { %v213_v37 = vpop.eup %212 }
 0x15e   :  { %v215_v38 = vpop.eup %214  ;;  %107 = vperm.xlu0 %207, %v213_v37  }
 0x15f   :  { %110 = vperm.xlu1 %206, %v215_v38  }
 0x1dd   :  { %v108_v39 = vpop.permute.xlu0 %107 }
 0x1de   :  { %v111_v40 = vpop.permute.xlu1 %110  ;;  %v115_v41 = vrot.slane %v108_v39, %v71_v17 }
 0x1df   :  { %v119_v42 = vrot.slane %v111_v40, %v71_v17 }
 0x1e1   :  { %v120_v43 = vsel %vm77_vm1, %v119_v42, %v115_v41 }
 0x1e2   :  { %v122_v44 = vsel %vm66_vm2, %v120_v43, 0.0 }
 0x1e3   :  { %v123_v45 = vsel %vm81_vm3, %v122_v44, 0.0 }
 0x1e4   :  { %124 = vadd.xlane.f32.xlu0 %v123_v45 }
 0x271   :  { %v125_v46 = vpop.xlane.xlu0 %124 }
 0x272   :  { %v126_v47 = vmax.f32 %v125_v46, 1e-30 }
 0x274   :  { %216 = vrcp.f32 %v126_v47 }
 0x27e   :  { %v217_v48 = vpop.eup %216 }
 0x27f   :  { %v128_v49 = vmul.f32 %v217_v48, %v122_v44 }
 0x281   :  { %v135_v50 = vrot.slane %v128_v49, %v88_v26  ;;  %129 = vst.msk [vmem:[#allocation7] sm:$0x3] %vm81_vm3, %v128_v49  ;;  %v142_v51 = vrot.slane %v128_v49, %v92_v27 }
 0x283   :  { %137 = vbcast.lane.b32.xlu1 %v135_v50, 256 }
 0x287   :  { %144 = vbcast.lane.b32.xlu1 %v142_v51, 256 }
 0x288   :  { %251 = shalt.err (!%p248_p12)
}
 0x289   :  { %s252_s14 = scalar_lea.hbm %s396_s5, 32 }
 0x28a   :  { %p253_p13 = scmp.ne.s32.totalorder %s396_s5, %s252_s14  ;;  %p256_p0 = scmp.lt.u32.totalorder %s252_s14, %s396_s5 }
 0x28c   :  { %p258_p1 = pnand %p256_p0, %p253_p13 }
 0x28e   :  { %261 = shalt.err (!%p258_p1)
}
 0x28f   :  { %189 = dma.vmem_to_hbm [thread:$0]  %s187_s3, 32, %s396_s5, [#allocation8]   ;;  %vm168_vm4 = vcmask 254976  }
 0x290   :  { %s295_s5 = smov [#allocation6]  }
 0x291   :  { %s176_s21 = sshll.u32 %s295_s5, 4  ;;  %s177_s21 = int_to_ptr.vmem [resolvable:$true] %s176_s21 }
 0x292   :  { %s262_s22 = scalar_lea.vmem %s177_s21, 32  ;;  %p267_p3 = scmp.lt.s32.totalorder %s177_s21, %s177_s21 }
 0x293   :  { %p263_p2 = scmp.ne.s32.totalorder %s177_s21, %s262_s22  ;;  %p268_p4 = scmp.lt.s32.totalorder %s262_s22, %s262_s22 }
 0x295   :  { %p269_p5 = por %p268_p4, %p267_p3 }
 0x297   :  { %p270_p6 = pnand %p269_p5, %p263_p2 }
 0x2f5   :  { %v138_v52 = vpop.permute.xlu1 %137 }
 0x2f6   :  { %v146_v53 = vmul.f32 %v138_v52, %v341_v2 }
 0x2f8   :  { %v148_v54 = vsel %vm48_vm0, %v146_v53, 0.0 }
 0x2f9   :  { %v149_v55 = vrot.slane %v148_v54, 4  ;;  %v145_v56 = vpop.permute.xlu1 %144 }
 0x2fa   :  { %v147_v57 = vmul.f32 %v145_v56, %v343_v3 }
 0x2fb   :  { %v150_v58 = vadd.f32 %v149_v55, %v148_v54 }
 0x2fc   :  { %v155_v59 = vsel %vm48_vm0, %v147_v57, 0.0 }
 0x2fd   :  { %v151_v60 = vrot.slane %v150_v58, 2  ;;  %v156_v61 = vrot.slane %v155_v59, 4 }
 0x2ff   :  { %v152_v62 = vadd.f32 %v151_v60, %v150_v58  ;;  %v157_v63 = vadd.f32 %v156_v61, %v155_v59 }
 0x301   :  { %v158_v0 = vrot.slane %v157_v63, 2  ;;  %v153_v1 = vrot.slane %v152_v62, 1 }
 0x303   :  { %v159_v4 = vadd.f32 %v158_v0, %v157_v63  ;;  %v154_v2 = vadd.f32 %v153_v1, %v152_v62 }
 0x305   :  { %v160_v5 = vrot.slane %v159_v4, 1 }
 0x307   :  { %v161_v6 = vadd.f32 %v160_v5, %v159_v4 }
 0x309   :  { %v166_v7 = vsel %vm77_vm1, %v161_v6, %v154_v2 }
 0x30a   :  { %169 = vst.msk [vmem:[#allocation6] sm:$0x3] %vm168_vm4, %v166_v7 }
 0x30b   :  { %273 = shalt.err (!%p270_p6)
}
 0x30c   :  { %s274_s25 = scalar_lea.hbm %s395_s4, 32 }
 0x30d   :  { %p275_p7 = scmp.ne.s32.totalorder %s395_s4, %s274_s25  ;;  %p278_p8 = scmp.lt.u32.totalorder %s274_s25, %s395_s4 }
 0x30f   :  { %p280_p9 = pnand %p278_p8, %p275_p7 }
 0x311   :  { %283 = shalt.err (!%p280_p9)
}
 0x312   :  { %179 = dma.vmem_to_hbm [thread:$0]  %s177_s21, 32, %s395_s4, [#allocation5]  }
 0x313   :  { %286 = dma.done.wait [#allocation5], 32  }
 0x314   :  { %287 = vsyncadd [#allocation5], 4294967264 }
 0x315   :  { %288 = dma.done.wait [#allocation8], 32  }
 0x316   :  { %289 = vsyncadd [#allocation8], 4294967264 }
 0x317   :  { %196 = vsyncpa [#allocation4], 1 }
 0x318   :  { %197 = vsyncpa [#allocation5], 1 }
 0x319   :  { %198 = vsyncpa [#allocation8], 1 }

</bundles_post_ra>
